<compile_context>
chip_gen: v5e
topology: v5e:2x2
jax: 0.10.0
libtpu: 0.0.40
codegen_flags: <defaults>
</compile_context>

<pallas_src>
import functools

import jax
import jax.numpy as jnp
from jax import lax
from jax.experimental import pallas as pl
from jax.experimental.pallas import tpu as pltpu


def _phase_shuffle_kernel(k_ref, xpad_ref, o_ref, *, shift_factor):
    """One grid step = one (batch, channel-tile) block.

    k_ref    : SMEM int32[B]            (scalar-prefetched per-batch shifts)
    xpad_ref : VMEM block (1, Ct, T+2n) (reflect-padded input)
    o_ref    : VMEM block (1, Ct, T)
    """
    b = pl.program_id(0)
    n = shift_factor
    T = o_ref.shape[-1]

    # Window start into the padded time axis: n - k  in  {0, ..., 2n}.
    start = n - k_ref[b]

    # 2n+1 is tiny (shift_factor is typically 2), so select among static
    # window offsets: each branch is a plain static slice -> cheap lane shift,
    # only the selected branch executes.  (For a large shift_factor, switch to
    # a dynamic window: xpad_ref[:, :, pl.ds(start, T)].)
    branches = [
        (lambda j: (lambda: xpad_ref[:, :, j:j + T]))(j)
        for j in range(2 * n + 1)
    ]
    o_ref[...] = lax.switch(start, branches)


def _pick_c_tile(C, T, Tp, itemsize, budget_bytes):
    """Largest channel tile whose double-buffered in+out blocks fit the budget."""
    def cost(ct):
        return 2 * ct * (Tp + T) * itemsize  # double-buffered input + output

    if cost(C) <= budget_bytes:
        return C
    fallback = C
    ct = (C // 8) * 8
    while ct >= 8:
        if C % ct == 0:                # keep the (8, 128) block constraint happy
            fallback = ct
            if cost(ct) <= budget_bytes:
                return ct
        ct -= 8
    return fallback


def phase_shuffle(x, k_list, shift_factor, *, vmem_budget_bytes=8 * 1024 * 1024):
    """Pallas PhaseShuffle.  x: (B, C, T); k_list: (B,) int shifts in [-n, n]."""
    if shift_factor == 0:
        return x
    n = int(shift_factor)
    B, C, T = x.shape
    Tp = T + 2 * n

    # Reflect-pad once in the wrapper (O(B*C*2n) extra elements); the kernel
    # then does the data-dependent shift as a pure windowed copy.
    x_pad = jnp.pad(x, ((0, 0), (0, 0), (n, n)), mode="reflect")

    c_tile = _pick_c_tile(C, T, Tp, x.dtype.itemsize, vmem_budget_bytes)
    grid = (B, C // c_tile)

    kernel = functools.partial(_phase_shuffle_kernel, shift_factor=n)

    return pl.pallas_call(
        kernel,
        out_shape=jax.ShapeDtypeStruct((B, C, T), x.dtype),
        grid_spec=pltpu.PrefetchScalarGridSpec(
            num_scalar_prefetch=1,
            grid=grid,
            # index_maps receive (b, c, *prefetch_refs); prefetch ref unused here.
            in_specs=[pl.BlockSpec((1, c_tile, Tp), lambda b, c, k: (b, c, 0))],
            out_specs=pl.BlockSpec((1, c_tile, T), lambda b, c, k: (b, c, 0)),
        ),
        compiler_params=pltpu.CompilerParams(
            dimension_semantics=("parallel", "parallel"),
            vmem_limit_bytes=32 * 1024 * 1024,
        ),
    )(k_list.astype(jnp.int32), x_pad)


if __name__ == "__main__":
    key = jax.random.PRNGKey(0)
    kx, kk = jax.random.split(key)

    B, C, T = 4, 4, 16
    shift_factor = 2

    x = jax.random.normal(kx, (B, C, T), dtype=jnp.float32)
    # Deterministic stand-in for torch.Tensor(B).random_(0, 2n+1) - n; the
    # original module also samples the shifts on the host, outside any kernel.
    k_list = jax.random.randint(kk, (B,), -shift_factor, shift_factor + 1)

    y = phase_shuffle(x, k_list, shift_factor)
    jax.block_until_ready(y)

    # Pure-JAX reference: reflect-gather along the time axis.
    t = jnp.arange(T)
    src = jnp.abs(t[None, :] - k_list[:, None])
    src = jnp.where(src > T - 1, 2 * (T - 1) - src, src)           # (B, T)
    ref = jnp.take_along_axis(
        x, jnp.broadcast_to(src[:, None, :], (B, C, T)), axis=2)

    assert y.shape == x.shape, (y.shape, x.shape)
    assert jnp.array_equal(y, ref), "mismatch vs reference"
    print("KERNEL_OK")
</pallas_src>

<mosaic_0001>
module attributes {stable_mosaic.version = 11 : i64} {
  func.func @_phase_shuffle_kernel(%arg0: i32, %arg1: i32, %arg2: memref<4xi32, #tpu.memory_space<smem>>, %arg3: memref<1x4x20xf32, #tpu.memory_space<vmem>>, %arg4: memref<1x4x16xf32, #tpu.memory_space<vmem>>) attributes {dimension_semantics = [#tpu.dimension_semantics<parallel>, #tpu.dimension_semantics<parallel>], iteration_bounds = array<i64: 4, 1>, scalar_prefetch = 1 : i64, scratch_operands = 0 : i64, tpu.core_type = #tpu.core_type<tc>, window_params = [{transform_indices = @transform_0, window_bounds = array<i64: 1, 4, 20>}, {transform_indices = @transform_1, window_bounds = array<i64: 1, 4, 16>}]} {
    %0 = arith.index_cast %arg0 : i32 to index
    %1 = memref.load %arg2[%0] : memref<4xi32, #tpu.memory_space<smem>>
    %c2_i32 = arith.constant 2 : i32
    %2 = arith.subi %c2_i32, %1 : i32
    %c0_i32 = arith.constant 0 : i32
    %c4_i32 = arith.constant 4 : i32
    %3 = arith.maxsi %2, %c0_i32 : i32
    %4 = arith.minsi %3, %c4_i32 : i32
    %c0_i32_0 = arith.constant 0 : i32
    %5 = arith.cmpi ne, %4, %c0_i32_0 : i32
    %6 = scf.if %5 -> (vector<1x4x16xf32>) {
      %c1_i32 = arith.constant 1 : i32
      %8 = arith.subi %4, %c1_i32 : i32
      %c0_i32_3 = arith.constant 0 : i32
      %9 = arith.cmpi ne, %8, %c0_i32_3 : i32
      %10 = scf.if %9 -> (vector<1x4x16xf32>) {
        %c1_i32_4 = arith.constant 1 : i32
        %11 = arith.subi %8, %c1_i32_4 : i32
        %c0_i32_5 = arith.constant 0 : i32
        %12 = arith.cmpi ne, %11, %c0_i32_5 : i32
        %13 = scf.if %12 -> (vector<1x4x16xf32>) {
          %c1_i32_6 = arith.constant 1 : i32
          %14 = arith.subi %11, %c1_i32_6 : i32
          %c0_i32_7 = arith.constant 0 : i32
          %15 = arith.cmpi ne, %14, %c0_i32_7 : i32
          %16 = scf.if %15 -> (vector<1x4x16xf32>) {
            %c0_8 = arith.constant 0 : index
            %c0_9 = arith.constant 0 : index
            %c4 = arith.constant 4 : index
            %17 = vector.load %arg3[%c0_8, %c0_9, %c4] : memref<1x4x20xf32, #tpu.memory_space<vmem>>, vector<1x4x16xf32>
            scf.yield %17 : vector<1x4x16xf32>
          } else {
            %c0_8 = arith.constant 0 : index
            %c0_9 = arith.constant 0 : index
            %c3 = arith.constant 3 : index
            %17 = vector.load %arg3[%c0_8, %c0_9, %c3] : memref<1x4x20xf32, #tpu.memory_space<vmem>>, vector<1x4x16xf32>
            scf.yield %17 : vector<1x4x16xf32>
          }
          scf.yield %16 : vector<1x4x16xf32>
        } else {
          %c0_6 = arith.constant 0 : index
          %c0_7 = arith.constant 0 : index
          %c2 = arith.constant 2 : index
          %14 = vector.load %arg3[%c0_6, %c0_7, %c2] : memref<1x4x20xf32, #tpu.memory_space<vmem>>, vector<1x4x16xf32>
          scf.yield %14 : vector<1x4x16xf32>
        }
        scf.yield %13 : vector<1x4x16xf32>
      } else {
        %c0_4 = arith.constant 0 : index
        %c0_5 = arith.constant 0 : index
        %c1 = arith.constant 1 : index
        %11 = vector.load %arg3[%c0_4, %c0_5, %c1] : memref<1x4x20xf32, #tpu.memory_space<vmem>>, vector<1x4x16xf32>
        scf.yield %11 : vector<1x4x16xf32>
      }
      scf.yield %10 : vector<1x4x16xf32>
    } else {
      %c0_3 = arith.constant 0 : index
      %c0_4 = arith.constant 0 : index
      %c0_5 = arith.constant 0 : index
      %8 = vector.load %arg3[%c0_3, %c0_4, %c0_5] : memref<1x4x20xf32, #tpu.memory_space<vmem>>, vector<1x4x16xf32>
      scf.yield %8 : vector<1x4x16xf32>
    }
    %c0 = arith.constant 0 : index
    %c0_1 = arith.constant 0 : index
    %c0_2 = arith.constant 0 : index
    %7 = vector.load %arg4[%c0, %c0_1, %c0_2] : memref<1x4x16xf32, #tpu.memory_space<vmem>>, vector<1x4x16xf32>
    tpu.vector_store %arg4[%c0, %c0_1, %c0_2], %6 {strides = array<i32>} : memref<1x4x16xf32, #tpu.memory_space<vmem>>, vector<1x4x16xf32>,
    return
  }
  func.func @transform_0(%arg0: i32, %arg1: i32, %arg2: memref<4xi32, #tpu.memory_space<smem>>) -> (i32, i32, i32) {
    %c0_i32 = arith.constant 0 : i32
    %c0_i32_0 = arith.constant 0 : i32
    return %arg0, %arg1, %c0_i32 : i32, i32, i32
  }
  func.func @transform_1(%arg0: i32, %arg1: i32, %arg2: memref<4xi32, #tpu.memory_space<smem>>) -> (i32, i32, i32) {
    %c0_i32 = arith.constant 0 : i32
    %c0_i32_0 = arith.constant 0 : i32
    return %arg0, %arg1, %c0_i32 : i32, i32, i32
  }
}

</mosaic_0001>

<bundles_post_ra>
// kernel: tpu_custom_call.1
= control target key start
LH: loop header
LB: loop body
LE: loop exit
PB: predicated region body
PF: predicated region fallthrough
CT: control target
= control target key end

     0   :  { %s665_s12 = smov [#allocation3]   ;;  %s845_s0 = inlined_call_operand.hbm [shape: s32[4], index: 0, kind: input, shape index: {}]   ;;  %s846_s1 = inlined_call_operand.hbm [shape: f32[4,4,20], index: 1, kind: input, shape index: {}]   ;;  %s847_s2 = inlined_call_operand.hbm [shape: f32[4,4,16], index: 2, kind: output, shape index: {}]  }
   0x1   :  { %s8_s11 = sshll.u32 %s845_s0, 4  ;;  %s9_s11 = int_to_ptr.hbm [resolvable:$true] %s8_s11 }
   0x2   :  { %11 = dma.hbm_to_smem %s9_s11, 16, %s665_s12, [#allocation2] }
   0x3   :  { %603 = dma.done.wait [#allocation2], 16 }
   0x4   :  { %604 = vsyncadd [#allocation2], 4294967280 }
   0x5   :  { %14 = sfence }
   0x6   :  { %15 = vsyncpa [#allocation5], 0 }
   0x7   :  { %17 = vsyncpa [#allocation5 + $0x1], 0 }
   0x8   :  { %18 = vsyncpa [#allocation6], 0 }
   0x9   :  { %20 = vsyncpa [#allocation6 + $0x1], 0  ;;  %s688_s13 = smov 0   ;;  %s690_s14 = smov 0  }
   0xa   :  { %s692_s15 = smov 0   ;;  %s694_s16 = smov 0  }
   0xb   :  { %s696_s17 = smov 0   ;;  %s698_s0 = smov 0  }
   0xc LB: > { %s325_s18 = sadd.s32 4294967295, %s635_s0   ;;  %s326_s19 = sadd.s32 4294967294, %s635_s0   ;;  %s635_s0 = sphi %s698_s0, %s26_s0   ;;  %s631_s17 = sphi %s696_s17, %s858_s17   ;;  %s627_s16 = sphi %s694_s16, %s857_s16   ;;  %s623_s15 = sphi %s692_s15, %s856_s15   ;;  %s619_s14 = sphi %s690_s14, %s855_s14   ;;  %s615_s13 = sphi %s688_s13, %s854_s13  }
   0xd   : > { %s38_s20 = sadd.s32 1, %s631_s17  ;;  %s47_s21 = sadd.s32 1, %s623_s15 }
   0xe   : > { %p40_p0 = scmp.ge.s32.totalorder %s38_s20, 4  ;;  %p54_p1 = scmp.ne.s32.totalorder %s623_s15, %s619_s14 }
   0xf   : > { %p55_p2 = scmp.eq.s32.totalorder %s635_s0, 0  ;;  %p60_p3 = scmp.ne.s32.totalorder %s619_s14, %s615_s13 }
  0x10   : > { %s860_s20 = smov (%p40_p0, %s38_s20), 0  ;;  %p61_p5 = scmp.eq.s32.totalorder %s325_s18, 0 }
  0x11   : > { %p729_p4 = por %p55_p2, %p54_p1  ;;  %s42_s23 = ssub.s32 %s631_s17, %s860_s20 }
  0x12   : > { %p86_p6 = scmp.eq.s32.totalorder %s325_s18, 3  ;;  %p45_p7 = scmp.eq.s32.totalorder %s42_s23, 0 }
  0x13   : > { %p735_p8 = por %p61_p5, %p60_p3  ;;  %p92_p10 = scmp.eq.s32.totalorder %s326_s19, 3 }
  0x14   : > { %p739_p9 = por %p86_p6, %p54_p1  ;;  %p369_p12 = scmp.lt.s32.totalorder %s635_s0, 4 }
  0x15   : > { %s744_s26 = scalar_select %p45_p7, %s623_s15, %s47_s21  }
  0x16   : > { %p746_p11 = por %p92_p10, %p60_p3  ;;  %s112_s28 = sand.u32 1, %s623_s15  }
  0x17   : > { %s329_s29 = sshll.u32 %s112_s28, 2  ;;  %s330_s30 = sshll.u32 %s631_s17, 2 }
  0x18   : > { %s121_s5 = scalar_lea.hbm %s846_s1, %s330_s30  ;;  %s116_s6 = scalar_lea.vmem [#allocation4], %s329_s29 }
  0x19   : > { %s125_s7 = sshll.u32 %s116_s6, 4  ;;  %s123_s8 = sshll.u32 %s121_s5, 4  ;;  %s126_s7 = int_to_ptr.vmem [resolvable:$true] %s125_s7  ;;  %s124_s8 = int_to_ptr.hbm [resolvable:$true] %s123_s8 }
  0x1a   : > { %p362_p13 = pnand %p369_p12, %p729_p4  ;;  %p331_p0 = scmp.ge.s32.totalorder %s635_s0, 1 }
  0x1b   : > { %p130_p1 = scmp.lt.s32.totalorder %s635_s0, 5  ;;  %s113_s9 = scalar_lea.sflag [#allocation5], %s112_s28 }
  0x1c   : > { %364 = dma.hbm_to_vmem [thread:$0]  (!%p362_p13), %s124_s8, 64, %s126_s7, %s113_s9  }
  0x1d   : > { %p131_p2 = pnand %p331_p0, %p130_p1 }
  0x1e   : > { %s761_s10 = sand.u32 (!%p131_p2), 1, %s619_s14  }
  0x1f   : > { %134 = sbr.rel (%p131_p2) target bundleno = 565 (0x235), region = 24  ;;  %s332_s11 = sshll.u32 (!%p131_p2), %s761_s10, 2 }
  0x20   : > { %s137_s12 = scalar_lea.sflag (!%p131_p2), [#allocation5], %s761_s10  ;;  %s765_s18 = scalar_lea.vmem (!%p131_p2), [#allocation4], %s332_s11 }
  0x24   : > { %606 = dma.done.wait (%p735_p8), %s137_s12, 64  }
  0x25   : > { %608 = vsyncadd (%p735_p8), %s137_s12, 4294967232  ;;  %s160_s19 = sld [smem:[#allocation3 + %s627_s16]]  ;;  %s774_s22 = scalar_lea.vmem [#allocation7], %s332_s11  ;;  %v777_v0 = vmov 0  }
  0x2b   : > { %s161_s21 = ssub.s32 2, %s160_s19 }
  0x2c   : > { %p162_p3 = scmp.gt.s32.totalorder %s161_s21, 0  ;;  %p334_p4 = scmp.lt.s32.totalorder %s161_s21, 4 }
  0x2e   : > { %s862_s21 = smov (!%p162_p3, %s161_s21), 0 }
  0x2f   : > { %s864_s21 = smov (!%p334_p4, %s862_s21), 4 }
  0x30   : > { %p339_p5 = scmp.eq.s32.totalorder %s864_s21, 0 }
  0x31   : > { %s340_s23 = sadd.s32 (!%p339_p5), 4294967295, %s864_s21 }
  0x32   : > { %169 = sbr.rel (%p339_p5) target bundleno = 549 (0x225), region = 32  ;;  %p782_p6 = scmp.ne.s32.totalorder (!%p339_p5), %s340_s23, 0 }
  0x33   : > { %p341_p7 = scmp.eq.s32.totalorder (!%p339_p5), %s340_s23, 0 }
  0x37   : > { %v653_v0 = vmov 0   ;;  %174 = sbr.rel (%p341_p7) target bundleno = 428 (0x1ac), region = 36  ;;  %s342_s28 = sadd.s32 (!%p341_p7), 4294967294, %s864_s21 }
  0x38   : > { %p787_p8 = scmp.ne.s32.totalorder (!%p341_p7), %s342_s28, 0  ;;  %p343_p10 = scmp.eq.s32.totalorder (!%p341_p7), %s342_s28, 0 }
  0x3c   : > { %v645_v0 = vmov 0   ;;  %179 = sbr.rel (%p343_p10) target bundleno = 307 (0x133), region = 40  ;;  %s344_s30 = sadd.s32 (!%p343_p10), 4294967293, %s864_s21 }
  0x3d   : > { %p181_p12 = scmp.ne.s32.totalorder (!%p343_p10), %s344_s30, 0  ;;  %p345_p13 = scmp.eq.s32.totalorder (!%p343_p10), %s344_s30, 0 }
  0x41   : > { %v637_v0 = vmov 0   ;;  %184 = sbr.rel (%p345_p13) target bundleno = 186 (0xba), region = 44  ;;  %s666_s3 = smov (!%p345_p13), 124  }
  0x46   : > { %v185_v1 = vld [vmem:[%s765_s18] sm:$0xf] }
  0x47   : > { %187 = vrot.lane.b32.xlu0 %v185_v1, %s666_s3 }
  0xb9   : > { %v188_v0 = vpop.permute.xlu0 %187  }
  0xba PF: > { %193 = sbr.rel (%p181_p12) target bundleno = 307 (0x133), region = 48  ;;  %s667_s4 = smov (!%p181_p12), 125   ;;  %v639_v0 = vphi %v637_v0, %v188_v0  }
  0xbf   : > { %v194_v2 = vld [vmem:[%s765_s18] sm:$0xf] }
  0xc0   : > { %196 = vrot.lane.b32.xlu0 %v194_v2, %s667_s4 }
 0x132   : > { %v197_v0 = vpop.permute.xlu0 %196  }
 0x133 PF: > { %203 = sbr.rel (%p787_p8) target bundleno = 428 (0x1ac), region = 52  ;;  %s668_s5 = smov (!%p787_p8), 126   ;;  %v643_v0 = vphi %v639_v0, %v197_v0   ;;  %v647_v0 = vphi %v645_v0, %v643_v0  }
 0x138   : > { %v204_v3 = vld [vmem:[%s765_s18] sm:$0xf] }
 0x139   : > { %206 = vrot.lane.b32.xlu0 %v204_v3, %s668_s5 }
 0x1ab   : > { %v207_v0 = vpop.permute.xlu0 %206  }
 0x1ac PF: > { %213 = sbr.rel (%p782_p6) target bundleno = 549 (0x225), region = 56  ;;  %s669_s6 = smov (!%p782_p6), 127   ;;  %v651_v0 = vphi %v647_v0, %v207_v0   ;;  %v655_v0 = vphi %v653_v0, %v651_v0  }
 0x1b1   : > { %v214_v4 = vld [vmem:[%s765_s18] sm:$0xf] }
 0x1b2   : > { %216 = vrot.lane.b32.xlu0 %v214_v4, %s669_s6 }
 0x224   : > { %v217_v0 = vpop.permute.xlu0 %216  }
 0x225 PF: > { %s355_s7 = scalar_select %p339_p5, 1, 0  ;;  %v224_v5 = vld [vmem:[%s765_s18] sm:$0xf]  ;;  %vm226_vm0 = vcmask 125952   ;;  %v659_v0 = vphi %v655_v0, %v217_v0   ;;  %v663_v0 = vphi %v777_v0, %v659_v0  }
 0x226   : > { %s347_s8 = sshll.u32 %s627_s16, 2  ;;  %s242_s19 = sshll.u32 %s774_s22, 4  ;;  %s243_s19 = int_to_ptr.vmem [resolvable:$true] %s242_s19 }
 0x227   : > { %v356_v6 = vstv %s355_s7  ;;  %s240_s12 = scalar_lea.hbm %s847_s2, %s347_s8  ;;  %s229_s21 = scalar_lea.sflag [#allocation6], %s761_s10 }
 0x228   : > { %vm357_vm1 = vcmp.ne.s32.totalorder %v356_v6, 0  ;;  %s244_s23 = sshll.u32 %s240_s12, 4  ;;  %s543_s29 = scalar_lea.hbm %s847_s2, 16  ;;  %s245_s23 = int_to_ptr.hbm [resolvable:$true] %s244_s23 }
 0x229   : > { %v358_v7 = vsel %vm357_vm1, %v224_v5, %v663_v0  ;;  %s537_s24 = sshra.s32 %s245_s23, 4  ;;  %s538_s24 = int_to_ptr.hbm [resolvable:$true] %s537_s24 }
 0x22a   : > { %227 = vst.msk [vmem:[%s774_s22] sm:$0xf] %vm226_vm0, %v358_v7  ;;  %s539_s28 = scalar_lea.hbm %s538_s24, 4  ;;  %p544_p3 = scmp.lt.s32.totalorder %s538_s24, %s847_s2 }
 0x22b   : > { %p540_p0 = scmp.ne.s32.totalorder %s538_s24, %s539_s28  ;;  %p545_p4 = scmp.lt.s32.totalorder %s543_s29, %s539_s28 }
 0x22d   : > { %p541_p1 = pnand %p540_p0, %p739_p9  ;;  %p546_p5 = por %p545_p4, %p544_p3 }
 0x22f   : > { %p542_p2 = pneg %p541_p1 }
 0x231   : > { %p547_p6 = pnand %p546_p5, %p542_p2 }
 0x233   : > { %550 = shalt.err (!%p547_p6)
}
 0x234   : > { %359 = dma.vmem_to_hbm [thread:$0]  (%p739_p9), %s243_s19, 64, %s245_s23, %s229_s21  }
 0x235 PF: > { %p371_p7 = scmp.ge.s32.totalorder %s635_s0, 2  ;;  %s256_s10 = sand.u32 1, %s615_s13  }
 0x236   : > { %s257_s22 = scalar_lea.sflag [#allocation6], %s256_s10 }
 0x237   : > { %p366_p8 = pnand %p371_p7, %p746_p11 }
 0x239   : > { %p367_p10 = pneg %p366_p8 }
 0x23b   : > { %610 = dma.done.wait (%p367_p10), %s257_s22, 64  }
 0x23c   : > { %612 = vsyncadd (%p367_p10), %s257_s22, 4294967232  ;;  %s26_s0 = sadd.s32 1, %s635_s0   ;;  %s854_s13 = smov %s619_s14 }
 0x23d   : > { %p23_p12 = scmp.ge.s32.totalorder %s26_s0, 6   ;;  %s855_s14 = smov %s623_s15 }
 0x23e   : > { %s856_s15 = smov %s744_s26  ;;  %s857_s16 = smov %s631_s17 }
 0x23f   : > { %s858_s17 = smov %s860_s20  ;;  %25 = sbr.rel (!%p23_p12) target bundleno = 12 (0xc), region = 101 }
 0x244   :  { %263 = vsyncpa [#allocation5], 1 }
 0x245   :  { %265 = vsyncpa [#allocation5 + $0x1], 1 }
 0x246   :  { %266 = vsyncpa [#allocation6], 1 }
 0x247   :  { %268 = vsyncpa [#allocation6 + $0x1], 1 }

</bundles_post_ra>
